<compile_context>
chip_gen: v7x
topology: tpu7x:2x2x1
jax: 0.10.0
libtpu: 0.0.40
codegen_flags: <defaults>
</compile_context>

<pallas_src>
import jax
import jax.numpy as jnp
from jax.experimental import pallas as pl
from jax.experimental.pallas import tpu as pltpu


def _round_up(x, m):
    return (x + m - 1) // m * m


def fused_towers_kernel(x_ref, w_ih_ref, w_hh_ref, b_rnn_ref, w_fc_ref, b_fc_ref,
                        out_ref):
    """Per-tower view (leading tower axis squeezed away by the BlockSpecs):

      x_ref    : (B*T, D)   batch-first, row index = b*T + t
      w_ih_ref : (D,  Hp)   pre-transposed (right-multiply), zero-padded to Hp
      w_hh_ref : (Hp, Hp)
      b_rnn_ref: (1,  Hp)   b_ih + b_hh (zero-padded)
      w_fc_ref : (Hp, Hp)
      b_fc_ref : (1,  Hp)
      out_ref  : (B,  Hp)
    """
    BT, _ = x_ref.shape
    B, Hp = out_ref.shape
    T = BT // B

    # Hoisted input projection: one MXU-friendly matmul for all timesteps,
    # bias folded in (no per-step broadcast on the serial chain).
    xproj = (jnp.dot(x_ref[...], w_ih_ref[...], preferred_element_type=jnp.float32)
             + b_rnn_ref[...])                     # (B*T, Hp)
    xproj = xproj.reshape(B, T, Hp)

    w_hh = w_hh_ref[...]

    # Recurrence, fully unrolled; h lives in vregs (no VMEM traffic per step).
    # h_0 == 0  =>  first step has no W_hh contribution.
    h = jnp.tanh(xproj[:, 0, :])
    for t in range(1, T):
        h = jnp.tanh(xproj[:, t, :]
                     + jnp.dot(h, w_hh, preferred_element_type=jnp.float32))

    # Final Linear on the last hidden state.
    out_ref[...] = (jnp.dot(h, w_fc_ref[...], preferred_element_type=jnp.float32)
                    + b_fc_ref[...]).astype(out_ref.dtype)


def _pad_tower_params(p, H, Hp):
    """Zero-pad a tower's params to the lane-dense hidden width Hp."""
    pad = Hp - H
    w_ih = jnp.pad(p["w_ih"], ((0, 0), (0, pad)))
    w_hh = jnp.pad(p["w_hh"], ((0, pad), (0, pad)))
    b_rnn = jnp.pad((p["b_ih"] + p["b_hh"]).reshape(1, H), ((0, 0), (0, pad)))
    w_fc = jnp.pad(p["w_fc"], ((0, pad), (0, pad)))
    b_fc = jnp.pad(p["b_fc"].reshape(1, H), ((0, 0), (0, pad)))
    return w_ih, w_hh, b_rnn, w_fc, b_fc


@jax.jit
def two_tower_forward(query, document, q_params, d_params):
    """query/document: (B, T, D) batch-first.  Returns (query_emb, doc_emb), each (B, H)."""
    B, T, D = query.shape
    H = q_params["w_fc"].shape[1]
    Hp = _round_up(H, 128)          # lane-dense hidden width

    qw = _pad_tower_params(q_params, H, Hp)
    dw = _pad_tower_params(d_params, H, Hp)

    # Stack the two towers along a new leading axis: tower 0 = query, 1 = document.
    x = jnp.stack([query.reshape(B * T, D), document.reshape(B * T, D)])   # (2, B*T, D)
    w_ih, w_hh, b_rnn, w_fc, b_fc = (jnp.stack(ab) for ab in zip(qw, dw))

    def tower_spec(*shape):
        # Leading tower dim squeezed; each grid point i sees its own tower's slab.
        return pl.BlockSpec((None, *shape), lambda i: (i,) + (0,) * len(shape))

    grid_spec = pltpu.PrefetchScalarGridSpec(
        num_scalar_prefetch=0,
        grid=(2,),                      # one grid point per tower
        in_specs=[
            tower_spec(B * T, D),       # x
            tower_spec(D, Hp),          # w_ih
            tower_spec(Hp, Hp),         # w_hh
            tower_spec(1, Hp),          # b_rnn (b_ih + b_hh)
            tower_spec(Hp, Hp),         # w_fc
            tower_spec(1, Hp),          # b_fc
        ],
        out_specs=tower_spec(B, Hp),
    )

    # Advisory cost hint for XLA's scheduler.
    flops_per_tower = (2 * B * T * D * Hp            # hoisted input projection
                       + 2 * B * (T - 1) * Hp * Hp   # recurrence matmuls
                       + 2 * B * Hp * Hp)            # final FC
    bytes_accessed = 4 * (x.size + w_ih.size + w_hh.size + b_rnn.size
                          + w_fc.size + b_fc.size + 2 * B * Hp)
    cost = pl.CostEstimate(flops=2 * flops_per_tower,
                           transcendentals=2 * B * T * Hp,
                           bytes_accessed=bytes_accessed)

    out = pl.pallas_call(
        fused_towers_kernel,
        out_shape=jax.ShapeDtypeStruct((2, B, Hp), jnp.float32),
        grid_spec=grid_spec,
        compiler_params=pltpu.CompilerParams(
            dimension_semantics=("parallel",)),      # v7x: one tower per TensorCore
        cost_estimate=cost,
    )(x, w_ih, w_hh, b_rnn, w_fc, b_fc)

    # Slice back to the real hidden width.
    return out[0, :, :H], out[1, :, :H]


def init_tower_params(key, input_dim, hidden_dim):
    """Deterministic param init; weights stored pre-transposed for right-multiply."""
    ks = jax.random.split(key, 6)
    s = 0.1
    return {
        # PyTorch weight_ih_l0 is (H, D); we store its transpose (D, H).
        "w_ih": jax.random.normal(ks[0], (input_dim, hidden_dim), jnp.float32) * s,
        "w_hh": jax.random.normal(ks[1], (hidden_dim, hidden_dim), jnp.float32) * s,
        "b_ih": jax.random.normal(ks[2], (hidden_dim,), jnp.float32) * s,
        "b_hh": jax.random.normal(ks[3], (hidden_dim,), jnp.float32) * s,
        # PyTorch Linear weight is (H, H); stored transposed (in, out).
        "w_fc": jax.random.normal(ks[4], (hidden_dim, hidden_dim), jnp.float32) * s,
        "b_fc": jax.random.normal(ks[5], (hidden_dim,), jnp.float32) * s,
    }


def tower_reference(x_btd, params):
    """Pure-JAX reference of the PyTorch Tower forward (batch_first RNN + Linear)."""
    B, T, D = x_btd.shape
    H = params["w_fc"].shape[1]
    h = jnp.zeros((B, H), jnp.float32)
    b = params["b_ih"] + params["b_hh"]
    for t in range(T):
        h = jnp.tanh(x_btd[:, t, :] @ params["w_ih"] + h @ params["w_hh"] + b)
    return h @ params["w_fc"] + params["b_fc"]


if __name__ == "__main__":
    # Small shapes consistent with the module: (batch, seq, input_dim), hidden=32
    B, T, D, H = 2, 8, 32, 32

    key = jax.random.PRNGKey(0)
    k_q, k_d, k_qp, k_dp = jax.random.split(key, 4)

    query = jax.random.normal(k_q, (B, T, D), jnp.float32)
    document = jax.random.normal(k_d, (B, T, D), jnp.float32)

    q_params = init_tower_params(k_qp, D, H)
    d_params = init_tower_params(k_dp, D, H)

    query_emb, doc_emb = two_tower_forward(query, document, q_params, d_params)
    query_emb = jax.block_until_ready(query_emb)
    doc_emb = jax.block_until_ready(doc_emb)

    # Sanity check against a pure-JAX reference of the PyTorch semantics.
    ref_q = tower_reference(query, q_params)
    ref_d = tower_reference(document, d_params)
    assert query_emb.shape == (B, H) and doc_emb.shape == (B, H)
    assert jnp.allclose(query_emb, ref_q, rtol=1e-4, atol=1e-5)
    assert jnp.allclose(doc_emb, ref_d, rtol=1e-4, atol=1e-5)

    print("KERNEL_OK")
</pallas_src>

<mosaic_0001>
module attributes {stable_mosaic.version = 11 : i64} {
  func.func @fused_towers_kernel(%arg0: i32, %arg1: memref<1x16x32xf32, #tpu.memory_space<vmem>>, %arg2: memref<1x32x128xf32, #tpu.memory_space<vmem>>, %arg3: memref<1x128x128xf32, #tpu.memory_space<vmem>>, %arg4: memref<1x1x128xf32, #tpu.memory_space<vmem>>, %arg5: memref<1x128x128xf32, #tpu.memory_space<vmem>>, %arg6: memref<1x1x128xf32, #tpu.memory_space<vmem>>, %arg7: memref<1x2x128xf32, #tpu.memory_space<vmem>>) attributes {dimension_semantics = [#tpu.dimension_semantics<parallel>], iteration_bounds = array<i64: 2>, scalar_prefetch = 0 : i64, scratch_operands = 0 : i64, tpu.core_type = #tpu.core_type<tc>, window_params = [{transform_indices = @transform_0, window_bounds = array<i64: 1, 16, 32>}, {transform_indices = @transform_1, window_bounds = array<i64: 1, 32, 128>}, {transform_indices = @transform_2, window_bounds = array<i64: 1, 128, 128>}, {transform_indices = @transform_3, window_bounds = array<i64: 1, 1, 128>}, {transform_indices = @transform_4, window_bounds = array<i64: 1, 128, 128>}, {transform_indices = @transform_5, window_bounds = array<i64: 1, 1, 128>}, {transform_indices = @transform_6, window_bounds = array<i64: 1, 2, 128>}]} {
    %c0 = arith.constant 0 : index
    %c0_0 = arith.constant 0 : index
    %c0_1 = arith.constant 0 : index
    %0 = vector.load %arg1[%c0, %c0_0, %c0_1] : memref<1x16x32xf32, #tpu.memory_space<vmem>>, vector<1x16x32xf32>
    %1 = vector.shape_cast %0 : vector<1x16x32xf32> to vector<16x32xf32>
    %c0_2 = arith.constant 0 : index
    %c0_3 = arith.constant 0 : index
    %c0_4 = arith.constant 0 : index
    %2 = vector.load %arg2[%c0_2, %c0_3, %c0_4] : memref<1x32x128xf32, #tpu.memory_space<vmem>>, vector<1x32x128xf32>
    %3 = vector.shape_cast %2 : vector<1x32x128xf32> to vector<32x128xf32>
    %cst = arith.constant dense<0.000000e+00> : vector<16x128xf32>
    %4 = tpu.matmul %1, %3, %cst {dimension_numbers = #tpu.dot_dimension_numbers<[1], [0], [0], [1], [0, 0, 1, 1], [], []>} : vector<16x32xf32>, vector<32x128xf32>, vector<16x128xf32> -> vector<16x128xf32>
    %c0_5 = arith.constant 0 : index
    %c0_6 = arith.constant 0 : index
    %c0_7 = arith.constant 0 : index
    %5 = vector.load %arg4[%c0_5, %c0_6, %c0_7] : memref<1x1x128xf32, #tpu.memory_space<vmem>>, vector<1x1x128xf32>
    %6 = vector.shape_cast %5 : vector<1x1x128xf32> to vector<1x128xf32>
    %7 = vector.broadcast %6 : vector<1x128xf32> to vector<16x128xf32>
    %8 = arith.addf %4, %7 : vector<16x128xf32>
    %9 = vector.shape_cast %8 : vector<16x128xf32> to vector<2x8x128xf32>
    %c0_8 = arith.constant 0 : index
    %c0_9 = arith.constant 0 : index
    %c0_10 = arith.constant 0 : index
    %10 = vector.load %arg3[%c0_8, %c0_9, %c0_10] : memref<1x128x128xf32, #tpu.memory_space<vmem>>, vector<1x128x128xf32>
    %11 = vector.shape_cast %10 : vector<1x128x128xf32> to vector<128x128xf32>
    %12 = vector.extract_strided_slice %9 {offsets = [0, 0, 0], sizes = [2, 1, 128], strides = [1, 1, 1]} : vector<2x8x128xf32> to vector<2x1x128xf32>
    %13 = vector.shape_cast %12 : vector<2x1x128xf32> to vector<2x128xf32>
    %14 = math.tanh %13 : vector<2x128xf32>
    %15 = vector.extract_strided_slice %9 {offsets = [0, 1, 0], sizes = [2, 1, 128], strides = [1, 1, 1]} : vector<2x8x128xf32> to vector<2x1x128xf32>
    %16 = vector.shape_cast %15 : vector<2x1x128xf32> to vector<2x128xf32>
    %cst_11 = arith.constant dense<0.000000e+00> : vector<2x128xf32>
    %17 = tpu.matmul %14, %11, %cst_11 {dimension_numbers = #tpu.dot_dimension_numbers<[1], [0], [0], [1], [0, 0, 1, 1], [], []>} : vector<2x128xf32>, vector<128x128xf32>, vector<2x128xf32> -> vector<2x128xf32>
    %18 = arith.addf %16, %17 : vector<2x128xf32>
    %19 = math.tanh %18 : vector<2x128xf32>
    %20 = vector.extract_strided_slice %9 {offsets = [0, 2, 0], sizes = [2, 1, 128], strides = [1, 1, 1]} : vector<2x8x128xf32> to vector<2x1x128xf32>
    %21 = vector.shape_cast %20 : vector<2x1x128xf32> to vector<2x128xf32>
    %cst_12 = arith.constant dense<0.000000e+00> : vector<2x128xf32>
    %22 = tpu.matmul %19, %11, %cst_12 {dimension_numbers = #tpu.dot_dimension_numbers<[1], [0], [0], [1], [0, 0, 1, 1], [], []>} : vector<2x128xf32>, vector<128x128xf32>, vector<2x128xf32> -> vector<2x128xf32>
    %23 = arith.addf %21, %22 : vector<2x128xf32>
    %24 = math.tanh %23 : vector<2x128xf32>
    %25 = vector.extract_strided_slice %9 {offsets = [0, 3, 0], sizes = [2, 1, 128], strides = [1, 1, 1]} : vector<2x8x128xf32> to vector<2x1x128xf32>
    %26 = vector.shape_cast %25 : vector<2x1x128xf32> to vector<2x128xf32>
    %cst_13 = arith.constant dense<0.000000e+00> : vector<2x128xf32>
    %27 = tpu.matmul %24, %11, %cst_13 {dimension_numbers = #tpu.dot_dimension_numbers<[1], [0], [0], [1], [0, 0, 1, 1], [], []>} : vector<2x128xf32>, vector<128x128xf32>, vector<2x128xf32> -> vector<2x128xf32>
    %28 = arith.addf %26, %27 : vector<2x128xf32>
    %29 = math.tanh %28 : vector<2x128xf32>
    %30 = vector.extract_strided_slice %9 {offsets = [0, 4, 0], sizes = [2, 1, 128], strides = [1, 1, 1]} : vector<2x8x128xf32> to vector<2x1x128xf32>
    %31 = vector.shape_cast %30 : vector<2x1x128xf32> to vector<2x128xf32>
    %cst_14 = arith.constant dense<0.000000e+00> : vector<2x128xf32>
    %32 = tpu.matmul %29, %11, %cst_14 {dimension_numbers = #tpu.dot_dimension_numbers<[1], [0], [0], [1], [0, 0, 1, 1], [], []>} : vector<2x128xf32>, vector<128x128xf32>, vector<2x128xf32> -> vector<2x128xf32>
    %33 = arith.addf %31, %32 : vector<2x128xf32>
    %34 = math.tanh %33 : vector<2x128xf32>
    %35 = vector.extract_strided_slice %9 {offsets = [0, 5, 0], sizes = [2, 1, 128], strides = [1, 1, 1]} : vector<2x8x128xf32> to vector<2x1x128xf32>
    %36 = vector.shape_cast %35 : vector<2x1x128xf32> to vector<2x128xf32>
    %cst_15 = arith.constant dense<0.000000e+00> : vector<2x128xf32>
    %37 = tpu.matmul %34, %11, %cst_15 {dimension_numbers = #tpu.dot_dimension_numbers<[1], [0], [0], [1], [0, 0, 1, 1], [], []>} : vector<2x128xf32>, vector<128x128xf32>, vector<2x128xf32> -> vector<2x128xf32>
    %38 = arith.addf %36, %37 : vector<2x128xf32>
    %39 = math.tanh %38 : vector<2x128xf32>
    %40 = vector.extract_strided_slice %9 {offsets = [0, 6, 0], sizes = [2, 1, 128], strides = [1, 1, 1]} : vector<2x8x128xf32> to vector<2x1x128xf32>
    %41 = vector.shape_cast %40 : vector<2x1x128xf32> to vector<2x128xf32>
    %cst_16 = arith.constant dense<0.000000e+00> : vector<2x128xf32>
    %42 = tpu.matmul %39, %11, %cst_16 {dimension_numbers = #tpu.dot_dimension_numbers<[1], [0], [0], [1], [0, 0, 1, 1], [], []>} : vector<2x128xf32>, vector<128x128xf32>, vector<2x128xf32> -> vector<2x128xf32>
    %43 = arith.addf %41, %42 : vector<2x128xf32>
    %44 = math.tanh %43 : vector<2x128xf32>
    %45 = vector.extract_strided_slice %9 {offsets = [0, 7, 0], sizes = [2, 1, 128], strides = [1, 1, 1]} : vector<2x8x128xf32> to vector<2x1x128xf32>
    %46 = vector.shape_cast %45 : vector<2x1x128xf32> to vector<2x128xf32>
    %cst_17 = arith.constant dense<0.000000e+00> : vector<2x128xf32>
    %47 = tpu.matmul %44, %11, %cst_17 {dimension_numbers = #tpu.dot_dimension_numbers<[1], [0], [0], [1], [0, 0, 1, 1], [], []>} : vector<2x128xf32>, vector<128x128xf32>, vector<2x128xf32> -> vector<2x128xf32>
    %48 = arith.addf %46, %47 : vector<2x128xf32>
    %49 = math.tanh %48 : vector<2x128xf32>
    %c0_18 = arith.constant 0 : index
    %c0_19 = arith.constant 0 : index
    %c0_20 = arith.constant 0 : index
    %50 = vector.load %arg5[%c0_18, %c0_19, %c0_20] : memref<1x128x128xf32, #tpu.memory_space<vmem>>, vector<1x128x128xf32>
    %51 = vector.shape_cast %50 : vector<1x128x128xf32> to vector<128x128xf32>
    %cst_21 = arith.constant dense<0.000000e+00> : vector<2x128xf32>
    %52 = tpu.matmul %49, %51, %cst_21 {dimension_numbers = #tpu.dot_dimension_numbers<[1], [0], [0], [1], [0, 0, 1, 1], [], []>} : vector<2x128xf32>, vector<128x128xf32>, vector<2x128xf32> -> vector<2x128xf32>
    %c0_22 = arith.constant 0 : index
    %c0_23 = arith.constant 0 : index
    %c0_24 = arith.constant 0 : index
    %53 = vector.load %arg6[%c0_22, %c0_23, %c0_24] : memref<1x1x128xf32, #tpu.memory_space<vmem>>, vector<1x1x128xf32>
    %54 = vector.shape_cast %53 : vector<1x1x128xf32> to vector<1x128xf32>
    %55 = vector.broadcast %54 : vector<1x128xf32> to vector<2x128xf32>
    %56 = arith.addf %52, %55 : vector<2x128xf32>
    %c0_25 = arith.constant 0 : index
    %c0_26 = arith.constant 0 : index
    %c0_27 = arith.constant 0 : index
    %57 = vector.load %arg7[%c0_25, %c0_26, %c0_27] : memref<1x2x128xf32, #tpu.memory_space<vmem>>, vector<1x2x128xf32>
    %58 = vector.shape_cast %57 : vector<1x2x128xf32> to vector<2x128xf32>
    %59 = vector.shape_cast %56 : vector<2x128xf32> to vector<1x2x128xf32>
    tpu.vector_store %arg7[%c0_25, %c0_26, %c0_27], %59 {strides = array<i32>} : memref<1x2x128xf32, #tpu.memory_space<vmem>>, vector<1x2x128xf32>,
    return
  }
  func.func @transform_0(%arg0: i32) -> (i32, i32, i32) {
    %c0_i32 = arith.constant 0 : i32
    %c0_i32_0 = arith.constant 0 : i32
    %c0_i32_1 = arith.constant 0 : i32
    return %arg0, %c0_i32, %c0_i32_0 : i32, i32, i32
  }
  func.func @transform_1(%arg0: i32) -> (i32, i32, i32) {
    %c0_i32 = arith.constant 0 : i32
    %c0_i32_0 = arith.constant 0 : i32
    %c0_i32_1 = arith.constant 0 : i32
    return %arg0, %c0_i32, %c0_i32_0 : i32, i32, i32
  }
  func.func @transform_2(%arg0: i32) -> (i32, i32, i32) {
    %c0_i32 = arith.constant 0 : i32
    %c0_i32_0 = arith.constant 0 : i32
    %c0_i32_1 = arith.constant 0 : i32
    return %arg0, %c0_i32, %c0_i32_0 : i32, i32, i32
  }
  func.func @transform_3(%arg0: i32) -> (i32, i32, i32) {
    %c0_i32 = arith.constant 0 : i32
    %c0_i32_0 = arith.constant 0 : i32
    %c0_i32_1 = arith.constant 0 : i32
    return %arg0, %c0_i32, %c0_i32_0 : i32, i32, i32
  }
  func.func @transform_4(%arg0: i32) -> (i32, i32, i32) {
    %c0_i32 = arith.constant 0 : i32
    %c0_i32_0 = arith.constant 0 : i32
    %c0_i32_1 = arith.constant 0 : i32
    return %arg0, %c0_i32, %c0_i32_0 : i32, i32, i32
  }
  func.func @transform_5(%arg0: i32) -> (i32, i32, i32) {
    %c0_i32 = arith.constant 0 : i32
    %c0_i32_0 = arith.constant 0 : i32
    %c0_i32_1 = arith.constant 0 : i32
    return %arg0, %c0_i32, %c0_i32_0 : i32, i32, i32
  }
  func.func @transform_6(%arg0: i32) -> (i32, i32, i32) {
    %c0_i32 = arith.constant 0 : i32
    %c0_i32_0 = arith.constant 0 : i32
    %c0_i32_1 = arith.constant 0 : i32
    return %arg0, %c0_i32, %c0_i32_0 : i32, i32, i32
  }
}

</mosaic_0001>

<bundles_post_ra>
// kernel: two_tower_forward.1
= control target key start
LH: loop header
LB: loop body
LE: loop exit
PB: predicated region body
PF: predicated region fallthrough
CT: control target
= control target key end

     0   :  { %s1997_s21 = smov 0   ;;  %s2259_s0 = inlined_call_operand.vmem [shape: f32[2,16,32], index: 0, kind: input, shape index: {}]   ;;  %s2260_s1 = inlined_call_operand.vmem [shape: f32[2,32,128], index: 1, kind: input, shape index: {}]   ;;  %s2261_s2 = inlined_call_operand.vmem [shape: f32[2,128,128], index: 2, kind: input, shape index: {}]   ;;  %s2262_s3 = inlined_call_operand.vmem [shape: f32[2,1,128], index: 3, kind: input, shape index: {}]   ;;  %s2263_s4 = inlined_call_operand.vmem [shape: f32[2,128,128], index: 4, kind: input, shape index: {}]   ;;  %s2264_s5 = inlined_call_operand.vmem [shape: f32[2,1,128], index: 5, kind: input, shape index: {}]   ;;  %s2265_s6 = inlined_call_operand.vmem [shape: f32[2,2,128], index: 6, kind: output, shape index: {}]  }
   0x1 LB: > { %s1251_s22 = sadd.s32 4294967295, %s1957_s21   ;;  %p1255_p0 = scmp.ge.s32.totalorder %s1957_s21, 1  ;;  %s1957_s21 = sphi %s1997_s21, %s16_s21  }
   0x2   : > { %p258_p1 = scmp.lt.s32.totalorder %s1957_s21, 3 }
   0x4   : > { %p259_p2 = pnand %p1255_p0, %p258_p1 }
   0x5   : > { %p308_p3 = scmp.lt.s32.totalorder (!%p259_p2), %s1251_s22, 1  ;;  %v1959_v0 = vmov (!%p259_p2), 0.0|0.0   ;;  %vm351_vm0 = vcmask (!%p259_p2), 261120   ;;  %vm1960_vm1 = vmmov (!%p259_p2), 0   ;;  %v1961_v29 = vmov (!%p259_p2), 0.0  }
   0x6   : > { %262 = sbr.rel (%p259_p2) target bundleno = 2086 (0x826), region = 44  ;;  %1716 = vmatprep.subr.bf16.mxu1 (!%p259_p2), %v1959_v0  ;;  %1460 = vmatprep.mubr.msk.f32.mxu1 (!%p259_p2), %vm1960_vm1, %v1961_v29  ;;  %vm454_vm2 = vcmask (!%p259_p2), 1041409  }
   0xd   : > { %s2267_s22 = smov (!%p308_p3, %s1251_s22), 1 }
   0xe   : > { %s1272_s23 = sshll.u32 %s2267_s22, 5  ;;  %s1273_s24 = sshll.u32 %s2267_s22, 7 }
   0xf   : > { %s317_s27 = scalar_lea.vmem %s2260_s1, %s1272_s23  ;;  %s2018_s30 = scalar_lea.vmem %s2261_s2, %s1273_s24 }
  0x10   : > { %v340_v1 = vld [vmem:[%s317_s27] sm:$0xff]  ;;  %v341_v2 = vld [vmem:[%s317_s27 + $0x8] sm:$0xff]  ;;  %v342_v3 = vld [vmem:[%s317_s27 + $0x10] sm:$0xff]  ;;  %s1271_s7 = sshll.u32 %s2267_s22, 4  ;;  %s325_s13 = scalar_lea.vmem %s2262_s3, %s2267_s22 }
  0x11   : > { %v1708_v4 = vpack.c.bf16 %v341_v2, %v340_v1  ;;  %v343_v5 = vld [vmem:[%s317_s27 + $0x18] sm:$0xff]  ;;  %s312_s10 = scalar_lea.vmem %s2259_s0, %s1271_s7  ;;  %v433_v6 = vld [vmem:[%s2018_s30] sm:$0xff]  ;;  %v434_v7 = vld [vmem:[%s2018_s30 + $0x8] sm:$0xff]  ;;  %s2217_s16 = scalar_lea.vmem %s2263_s4, %s1273_s24 }
  0x12   : > { %v1712_v8 = vpack.c.bf16 %v343_v5, %v342_v3  ;;  %v338_v9 = vld [vmem:[%s312_s10] sm:$0xff]  ;;  %v2026_v10 = vpack.c.bf16 %v434_v7, %v433_v6  ;;  %v435_v11 = vld [vmem:[%s2018_s30 + $0x10] sm:$0xff]  ;;  %v436_v12 = vld [vmem:[%s2018_s30 + $0x18] sm:$0xff]  ;;  %s333_s19 = scalar_lea.vmem %s2264_s5, %s2267_s22  ;;  %s1264_s20 = sshll.u32 %s2267_s22, 1 }
  0x13   : > { %1709 = vmatprep.subr.bf16.mxu0 %v1708_v4  ;;  %1425 = vmatprep.mubr.msk.f32.mxu0 %vm351_vm0, %v338_v9  ;;  %v2032_v13 = vpack.c.bf16 %v436_v12, %v435_v11  ;;  %v437_v14 = vld [vmem:[%s2018_s30 + $0x20] sm:$0xff]  ;;  %v438_v15 = vld [vmem:[%s2018_s30 + $0x28] sm:$0xff]  ;;  %v439_v18 = vld [vmem:[%s2018_s30 + $0x30] sm:$0xff]  ;;  %s337_s25 = scalar_lea.vmem %s2265_s6, %s1264_s20 }
  0x14   : > { %1711 = vmatpush3.bf16.msra.mxu0 %v1708_v4  ;;  %1718 = vmatpush3.bf16.msra.mxu1 %v2026_v10  ;;  %v339_v16 = vld [vmem:[%s312_s10 + $0x8] sm:$0xff]  ;;  %v2038_v17 = vpack.c.bf16 %v438_v15, %v437_v14  ;;  %v440_v19 = vld [vmem:[%s2018_s30 + $0x38] sm:$0xff]  ;;  %v441_v21 = vld [vmem:[%s2018_s30 + $0x40] sm:$0xff] }
  0x15   : > { %1713 = vmatprep.subr.bf16.mxu0 %v1712_v8  ;;  %1719 = vmatprep.subr.bf16.mxu1 %v1959_v0  ;;  %v2046_v20 = vpack.c.bf16 %v440_v19, %v439_v18  ;;  %v442_v22 = vld [vmem:[%s2018_s30 + $0x48] sm:$0xff]  ;;  %v443_v24 = vld [vmem:[%s2018_s30 + $0x50] sm:$0xff]  ;;  %v444_v25 = vld [vmem:[%s2018_s30 + $0x58] sm:$0xff] }
  0x16   : > { %v2061_v23 = vpack.c.bf16 %v442_v22, %v441_v21  ;;  %v2068_v26 = vpack.c.bf16 %v444_v25, %v443_v24  ;;  %v445_v27 = vld [vmem:[%s2018_s30 + $0x60] sm:$0xff]  ;;  %v446_v28 = vld [vmem:[%s2018_s30 + $0x68] sm:$0xff]  ;;  %v447_v31 = vld [vmem:[%s2018_s30 + $0x70] sm:$0xff] }
  0x17   : > { %v2078_v30 = vpack.c.bf16 %v446_v28, %v445_v27  ;;  %v448_v32 = vld [vmem:[%s2018_s30 + $0x78] sm:$0xff]  ;;  %v1265_v34 = vld [vmem:[%s325_s13] ss:$0 sm:$0xff] }
  0x18   : > { %1715 = vmatpush3.bf16.msra.mxu0 %v1712_v8  ;;  %1721 = vmatpush3.bf16.msra.mxu1 %v2032_v13  ;;  %v2086_v33 = vpack.c.bf16 %v448_v32, %v447_v31 }
  0x19   : > { %1722 = vmatprep.subr.bf16.mxu1 %v1959_v0  ;;  %1740 = vmatprep.subr.bf16.mxu0 %v1959_v0 }
  0x1b   : > { %1426 = vmatmul.mubr.msk.f32.vlgmr.msra.gmra.mrb[0].mxu0 %vm351_vm0, %v339_v16 }
  0x1c   : > { %1724 = vmatpush3.bf16.msra.mxu1 %v2038_v17  ;;  %1742 = vmatpush3.bf16.msra.mxu0 %v2026_v10 }
  0x1d   : > { %1725 = vmatprep.subr.bf16.mxu1 %v1959_v0  ;;  %1743 = vmatprep.subr.bf16.mxu0 %v1959_v0 }
  0x1e   : > { %1495 = vmatprep.mubr.msk.f32.mxu0 %vm1960_vm1, %v1961_v29 }
  0x20   : > { %1727 = vmatpush3.bf16.msra.mxu1 %v2046_v20  ;;  %1745 = vmatpush3.bf16.msra.mxu0 %v2032_v13 }
  0x21   : > { %1728 = vmatprep.subr.bf16.mxu1 %v1959_v0  ;;  %1746 = vmatprep.subr.bf16.mxu0 %v1959_v0 }
  0x24   : > { %1748 = vmatpush3.bf16.msra.mxu0 %v2038_v17  ;;  %1730 = vmatpush3.bf16.msra.mxu1 %v2061_v23 }
  0x25   : > { %1749 = vmatprep.subr.bf16.mxu0 %v1959_v0  ;;  %1731 = vmatprep.subr.bf16.mxu1 %v1959_v0 }
  0x28   : > { %1751 = vmatpush3.bf16.msra.mxu0 %v2046_v20  ;;  %1733 = vmatpush3.bf16.msra.mxu1 %v2068_v26 }
  0x29   : > { %1752 = vmatprep.subr.bf16.mxu0 %v1959_v0  ;;  %1734 = vmatprep.subr.bf16.mxu1 %v1959_v0 }
  0x2c   : > { %1754 = vmatpush3.bf16.msra.mxu0 %v2061_v23  ;;  %1736 = vmatpush3.bf16.msra.mxu1 %v2078_v30 }
  0x2d   : > { %1755 = vmatprep.subr.bf16.mxu0 %v1959_v0  ;;  %1737 = vmatprep.subr.bf16.mxu1 %v1959_v0 }
  0x30   : > { %1757 = vmatpush3.bf16.msra.mxu0 %v2068_v26  ;;  %1739 = vmatpush3.bf16.msra.mxu1 %v2086_v33 }
  0x31   : > { %1758 = vmatprep.subr.bf16.mxu0 %v1959_v0  ;;  %1764 = vmatprep.subr.bf16.mxu1 %v1959_v0 }
  0x34   : > { %1760 = vmatpush3.bf16.msra.mxu0 %v2078_v30 }
  0x35   : > { %1761 = vmatprep.subr.bf16.mxu0 %v1959_v0 }
  0x38   : > { %1763 = vmatpush3.bf16.msra.mxu0 %v2086_v33 }
  0x39   : > { %1788 = vmatprep.subr.bf16.mxu0 %v1959_v0 }
  0xee   : > { %v1427_v35 = vpop.f32.mrb[0].mxu0 }
  0xef   : > { %v2099_v36 = vadd.f32 %v1427_v35, %v1265_v34  ;;  %v424_v37 = vpop.f32.mrb[1].mxu0  ;;  %v1045_v35 = vld [vmem:[%s2217_s16 + $0x8] sm:$0xff] }
  0xf0   : > { %v2101_v38 = vadd.f32 %v1265_v34, %v424_v37  ;;  %v1046_v37 = vld [vmem:[%s2217_s16 + $0x10] sm:$0xff] }
  0xf1   : > { %1919 = vtanh.f32 %v2099_v36 }
  0xf2   : > { %1921 = vtanh.f32 %v2101_v38 }
  0xfb   : > { %v1920_v39 = vpop.eup %1919 }
  0xfc   : > { %v1922_v40 = vpop.eup %1921  ;;  %v453_v41 = vrot.slane %v1920_v39, 7 }
  0xfe   : > { %v455_v42 = vsel %vm454_vm2, %v453_v41, %v1922_v40  ;;  %v1047_v40 = vld [vmem:[%s2217_s16 + $0x18] sm:$0xff] }
  0xff   : > { %1461 = vmatmul.mubr.f32.vlgmr.msra.gmra.mrb[0].mxu1 %v455_v42  ;;  %v1888_v41 = vpack.c.bf16 %v1047_v40, %v1046_v37  ;;  %v1049_v42 = vld [vmem:[%s2217_s16 + $0x28] sm:$0xff] }
 0x100   : > { %1766 = vmatpush3.bf16.msra.mxu1 %v2026_v10  ;;  %1530 = vmatprep.mubr.msk.f32.mxu1 %vm1960_vm1, %v1961_v29 }
 0x101   : > { %1767 = vmatprep.subr.bf16.mxu1 %v1959_v0 }
 0x104   : > { %1769 = vmatpush3.bf16.msra.mxu1 %v2032_v13 }
 0x105   : > { %1770 = vmatprep.subr.bf16.mxu1 %v1959_v0 }
 0x108   : > { %1772 = vmatpush3.bf16.msra.mxu1 %v2038_v17 }
 0x109   : > { %1773 = vmatprep.subr.bf16.mxu1 %v1959_v0 }
 0x10c   : > { %1775 = vmatpush3.bf16.msra.mxu1 %v2046_v20 }
 0x10d   : > { %1776 = vmatprep.subr.bf16.mxu1 %v1959_v0 }
 0x110   : > { %1778 = vmatpush3.bf16.msra.mxu1 %v2061_v23 }
 0x111   : > { %1779 = vmatprep.subr.bf16.mxu1 %v1959_v0 }
 0x114   : > { %1781 = vmatpush3.bf16.msra.mxu1 %v2068_v26 }
 0x115   : > { %1782 = vmatprep.subr.bf16.mxu1 %v1959_v0 }
 0x118   : > { %1784 = vmatpush3.bf16.msra.mxu1 %v2078_v30 }
 0x119   : > { %1785 = vmatprep.subr.bf16.mxu1 %v1959_v0 }
 0x11c   : > { %1787 = vmatpush3.bf16.msra.mxu1 %v2086_v33 }
 0x11d   : > { %1812 = vmatprep.subr.bf16.mxu1 %v1959_v0 }
 0x1d2   : > { %v523_v43 = vpop.f32.mrb[0].mxu1 }
 0x1d3   : > { %v528_v44 = vrot.slane %v523_v43, 7  ;;  %v1462_v45 = vpop.f32.mrb[1].mxu1  ;;  %v532_v47 = vadd.f32 %v523_v43, %v2099_v36 }
 0x1d5   : > { %v531_v46 = vadd.f32 %v528_v44, %v2101_v38 }
 0x1d7   : > { %1923 = vtanh.f32 %v531_v46 }
 0x1d8   : > { %1925 = vtanh.f32 %v532_v47 }
 0x1e1   : > { %v1924_v48 = vpop.eup %1923 }
 0x1e2   : > { %v537_v49 = vrot.slane %v1924_v48, 1  ;;  %v1926_v50 = vpop.eup %1925 }
 0x1e4   : > { %v538_v51 = vsel %vm454_vm2, %v1926_v50, %v537_v49 }
 0x1e5   : > { %1496 = vmatmul.mubr.f32.vlgmr.msra.gmra.mrb[2].mxu0 %v538_v51 }
 0x1e6   : > { %1790 = vmatpush3.bf16.msra.mxu0 %v2026_v10  ;;  %1565 = vmatprep.mubr.msk.f32.mxu0 %vm1960_vm1, %v1961_v29 }
 0x1e7   : > { %1791 = vmatprep.subr.bf16.mxu0 %v1959_v0 }
 0x1ea   : > { %1793 = vmatpush3.bf16.msra.mxu0 %v2032_v13 }
 0x1eb   : > { %1794 = vmatprep.subr.bf16.mxu0 %v1959_v0 }
 0x1ee   : > { %1796 = vmatpush3.bf16.msra.mxu0 %v2038_v17 }
 0x1ef   : > { %1797 = vmatprep.subr.bf16.mxu0 %v1959_v0 }
 0x1f2   : > { %1799 = vmatpush3.bf16.msra.mxu0 %v2046_v20 }
 0x1f3   : > { %1800 = vmatprep.subr.bf16.mxu0 %v1959_v0 }
 0x1f6   : > { %1802 = vmatpush3.bf16.msra.mxu0 %v2061_v23 }
 0x1f7   : > { %1803 = vmatprep.subr.bf16.mxu0 %v1959_v0 }
 0x1fa   : > { %1805 = vmatpush3.bf16.msra.mxu0 %v2068_v26 }
 0x1fb   : > { %1806 = vmatprep.subr.bf16.mxu0 %v1959_v0 }
 0x1fe   : > { %1808 = vmatpush3.bf16.msra.mxu0 %v2078_v30 }
 0x1ff   : > { %1809 = vmatprep.subr.bf16.mxu0 %v1959_v0 }
 0x202   : > { %1811 = vmatpush3.bf16.msra.mxu0 %v2086_v33 }
 0x203   : > { %1836 = vmatprep.subr.bf16.mxu0 %v1959_v0 }
 0x2b8   : > { %v606_v52 = vpop.f32.mrb[2].mxu0 }
 0x2b9   : > { %v611_v53 = vrot.slane %v606_v52, 6  ;;  %v612_v54 = vrot.slane %v606_v52, 7  ;;  %v1497_v55 = vpop.f32.mrb[3].mxu0 }
 0x2ba   : > { %v1050_v55 = vld [vmem:[%s2217_s16 + $0x30] sm:$0xff] }
 0x2bb   : > { %v615_v56 = vadd.f32 %v611_v53, %v2101_v38  ;;  %v616_v57 = vadd.f32 %v612_v54, %v2099_v36 }
 0x2bd   : > { %1927 = vtanh.f32 %v615_v56  ;;  %v1051_v56 = vld [vmem:[%s2217_s16 + $0x38] sm:$0xff] }
 0x2be   : > { %1929 = vtanh.f32 %v616_v57  ;;  %v1894_v57 = vpack.c.bf16 %v1051_v56, %v1050_v55 }
 0x2c7   : > { %v1928_v58 = vpop.eup %1927 }
 0x2c8   : > { %v1930_v59 = vpop.eup %1929  ;;  %v621_v60 = vrot.slane %v1928_v58, 2  ;;  %v1052_v58 = vld [vmem:[%s2217_s16 + $0x40] sm:$0xff] }
 0x2c9   : > { %v622_v61 = vrot.slane %v1930_v59, 1  ;;  %v1053_v59 = vld [vmem:[%s2217_s16 + $0x48] sm:$0xff] }
 0x2cb   : > { %v623_v62 = vsel %vm454_vm2, %v622_v61, %v621_v60  ;;  %v1897_v60 = vpack.c.bf16 %v1053_v59, %v1052_v58  ;;  %v1054_v61 = vld [vmem:[%s2217_s16 + $0x50] sm:$0xff] }
 0x2cc   : > { %1531 = vmatmul.mubr.f32.vlgmr.msra.gmra.mrb[2].mxu1 %v623_v62  ;;  %v1055_v62 = vld [vmem:[%s2217_s16 + $0x58] sm:$0xff] }
 0x2cd   : > { %1814 = vmatpush3.bf16.msra.mxu1 %v2026_v10  ;;  %1600 = vmatprep.mubr.msk.f32.mxu1 %vm1960_vm1, %v1961_v29 }
 0x2ce   : > { %1815 = vmatprep.subr.bf16.mxu1 %v1959_v0 }
 0x2d1   : > { %1817 = vmatpush3.bf16.msra.mxu1 %v2032_v13 }
 0x2d2   : > { %1818 = vmatprep.subr.bf16.mxu1 %v1959_v0 }
 0x2d5   : > { %1820 = vmatpush3.bf16.msra.mxu1 %v2038_v17 }
 0x2d6   : > { %1821 = vmatprep.subr.bf16.mxu1 %v1959_v0 }
 0x2d9   : > { %1823 = vmatpush3.bf16.msra.mxu1 %v2046_v20 }
 0x2da   : > { %1824 = vmatprep.subr.bf16.mxu1 %v1959_v0 }
 0x2dd   : > { %1826 = vmatpush3.bf16.msra.mxu1 %v2061_v23 }
 0x2de   : > { %1827 = vmatprep.subr.bf16.mxu1 %v1959_v0 }
 0x2e1   : > { %1829 = vmatpush3.bf16.msra.mxu1 %v2068_v26 }
 0x2e2   : > { %1830 = vmatprep.subr.bf16.mxu1 %v1959_v0 }
 0x2e5   : > { %1832 = vmatpush3.bf16.msra.mxu1 %v2078_v30 }
 0x2e6   : > { %1833 = vmatprep.subr.bf16.mxu1 %v1959_v0 }
 0x2e9   : > { %1835 = vmatpush3.bf16.msra.mxu1 %v2086_v33 }
 0x2ea   : > { %1860 = vmatprep.subr.bf16.mxu1 %v1959_v0 }
 0x39f   : > { %v691_v63 = vpop.f32.mrb[2].mxu1 }
 0x3a0   : > { %v696_v1 = vrot.slane %v691_v63, 5  ;;  %v697_v2 = vrot.slane %v691_v63, 6  ;;  %v1532_v3 = vpop.f32.mrb[3].mxu1  ;;  %v1900_v63 = vpack.c.bf16 %v1055_v62, %v1054_v61 }
 0x3a2   : > { %v700_v4 = vadd.f32 %v696_v1, %v2101_v38  ;;  %v701_v5 = vadd.f32 %v697_v2, %v2099_v36  ;;  %v1056_v1 = vld [vmem:[%s2217_s16 + $0x60] sm:$0xff]  ;;  %v1057_v2 = vld [vmem:[%s2217_s16 + $0x68] sm:$0xff] }
 0x3a3   : > { %v1903_v3 = vpack.c.bf16 %v1057_v2, %v1056_v1 }
 0x3a4   : > { %1931 = vtanh.f32 %v700_v4  ;;  %v1058_v4 = vld [vmem:[%s2217_s16 + $0x70] sm:$0xff] }
 0x3a5   : > { %1933 = vtanh.f32 %v701_v5  ;;  %v1059_v5 = vld [vmem:[%s2217_s16 + $0x78] sm:$0xff] }
 0x3ae   : > { %v1932_v6 = vpop.eup %1931 }
 0x3af   : > { %v1934_v7 = vpop.eup %1933  ;;  %v706_v8 = vrot.slane %v1932_v6, 3  ;;  %v1906_v6 = vpack.c.bf16 %v1059_v5, %v1058_v4 }
 0x3b0   : > { %v707_v9 = vrot.slane %v1934_v7, 2 }
 0x3b2   : > { %v708_v11 = vsel %vm454_vm2, %v707_v9, %v706_v8 }
 0x3b3   : > { %1566 = vmatmul.mubr.f32.vlgmr.msra.gmra.mrb[4].mxu0 %v708_v11 }
 0x3b4   : > { %1838 = vmatpush3.bf16.msra.mxu0 %v2026_v10  ;;  %1635 = vmatprep.mubr.msk.f32.mxu0 %vm1960_vm1, %v1961_v29 }
 0x3b5   : > { %1839 = vmatprep.subr.bf16.mxu0 %v1959_v0 }
 0x3b8   : > { %1841 = vmatpush3.bf16.msra.mxu0 %v2032_v13 }
 0x3b9   : > { %1842 = vmatprep.subr.bf16.mxu0 %v1959_v0 }
 0x3bc   : > { %1844 = vmatpush3.bf16.msra.mxu0 %v2038_v17 }
 0x3bd   : > { %1845 = vmatprep.subr.bf16.mxu0 %v1959_v0 }
 0x3c0   : > { %1847 = vmatpush3.bf16.msra.mxu0 %v2046_v20 }
 0x3c1   : > { %1848 = vmatprep.subr.bf16.mxu0 %v1959_v0 }
 0x3c4   : > { %1850 = vmatpush3.bf16.msra.mxu0 %v2061_v23 }
 0x3c5   : > { %1851 = vmatprep.subr.bf16.mxu0 %v1959_v0 }
 0x3c8   : > { %1853 = vmatpush3.bf16.msra.mxu0 %v2068_v26 }
 0x3c9   : > { %1854 = vmatprep.subr.bf16.mxu0 %v1959_v0 }
 0x3cc   : > { %1856 = vmatpush3.bf16.msra.mxu0 %v2078_v30 }
 0x3cd   : > { %1857 = vmatprep.subr.bf16.mxu0 %v1959_v0 }
 0x3d0   : > { %1859 = vmatpush3.bf16.msra.mxu0 %v2086_v33 }
 0x3d1   : > { %1884 = vmatprep.subr.bf16.mxu0 %v1959_v0 }
 0x486   : > { %v776_v12 = vpop.f32.mrb[4].mxu0 }
 0x487   : > { %v781_v14 = vrot.slane %v776_v12, 4  ;;  %v782_v15 = vrot.slane %v776_v12, 5  ;;  %v1567_v16 = vpop.f32.mrb[5].mxu0 }
 0x489   : > { %v785_v18 = vadd.f32 %v781_v14, %v2101_v38  ;;  %v786_v19 = vadd.f32 %v782_v15, %v2099_v36 }
 0x48b   : > { %1935 = vtanh.f32 %v785_v18 }
 0x48c   : > { %1937 = vtanh.f32 %v786_v19 }
 0x495   : > { %v1936_v21 = vpop.eup %1935 }
 0x496   : > { %v1938_v22 = vpop.eup %1937  ;;  %v791_v24 = vrot.slane %v1936_v21, 4  ;;  %v1268_v21 = vld [vmem:[%s333_s19] ss:$0 sm:$0xff] }
 0x497   : > { %v792_v25 = vrot.slane %v1938_v22, 3 }
 0x499   : > { %v793_v27 = vsel %vm454_vm2, %v792_v25, %v791_v24 }
 0x49a   : > { %1601 = vmatmul.mubr.f32.vlgmr.msra.gmra.mrb[4].mxu1 %v793_v27 }
 0x49b   : > { %1862 = vmatpush3.bf16.msra.mxu1 %v2026_v10  ;;  %1670 = vmatprep.mubr.msk.f32.mxu1 %vm1960_vm1, %v1961_v29 }
 0x49c   : > { %1863 = vmatprep.subr.bf16.mxu1 %v1959_v0 }
 0x49f   : > { %1865 = vmatpush3.bf16.msra.mxu1 %v2032_v13 }
 0x4a0   : > { %1866 = vmatprep.subr.bf16.mxu1 %v1959_v0 }
 0x4a3   : > { %1868 = vmatpush3.bf16.msra.mxu1 %v2038_v17 }
 0x4a4   : > { %1869 = vmatprep.subr.bf16.mxu1 %v1959_v0 }
 0x4a7   : > { %1871 = vmatpush3.bf16.msra.mxu1 %v2046_v20 }
 0x4a8   : > { %1872 = vmatprep.subr.bf16.mxu1 %v1959_v0 }
 0x4ab   : > { %1874 = vmatpush3.bf16.msra.mxu1 %v2061_v23 }
 0x4ac   : > { %1875 = vmatprep.subr.bf16.mxu1 %v1959_v0 }
 0x4af   : > { %1877 = vmatpush3.bf16.msra.mxu1 %v2068_v26 }
 0x4b0   : > { %1878 = vmatprep.subr.bf16.mxu1 %v1959_v0 }
 0x4b3   : > { %1880 = vmatpush3.bf16.msra.mxu1 %v2078_v30 }
 0x4b4   : > { %1881 = vmatprep.subr.bf16.mxu1 %v1959_v0 }
 0x4b7   : > { %1883 = vmatpush3.bf16.msra.mxu1 %v2086_v33  ;;  %v1044_v33 = vld [vmem:[%s2217_s16] sm:$0xff] }
 0x4b8   : > { %v1885_v39 = vpack.c.bf16 %v1045_v35, %v1044_v33 }
 0x56d   : > { %v861_v10 = vpop.f32.mrb[4].mxu1 }
 0x56e   : > { %v866_v13 = vrot.slane %v861_v10, 3  ;;  %v867_v17 = vrot.slane %v861_v10, 4  ;;  %v1602_v20 = vpop.f32.mrb[5].mxu1 }
 0x570   : > { %v870_v28 = vadd.f32 %v866_v13, %v2101_v38  ;;  %v871_v23 = vadd.f32 %v867_v17, %v2099_v36 }
 0x572   : > { %1939 = vtanh.f32 %v870_v28 }
 0x573   : > { %1941 = vtanh.f32 %v871_v23 }
 0x57c   : > { %v1940_v26 = vpop.eup %1939 }
 0x57d   : > { %v1942_v31 = vpop.eup %1941  ;;  %v876_v32 = vrot.slane %v1940_v26, 5 }
 0x57e   : > { %v877_v34 = vrot.slane %v1942_v31, 4 }
 0x580   : > { %v878_v30 = vsel %vm454_vm2, %v877_v34, %v876_v32 }
 0x581   : > { %1636 = vmatmul.mubr.f32.vlgmr.msra.gmra.mrb[6].mxu0 %v878_v30 }
 0x582   : > { %1705 = vmatprep.mubr.msk.f32.mxu0 %vm1960_vm1, %v1961_v29  ;;  %1886 = vmatpush3.bf16.msra.mxu0 %v1885_v39  ;;  %v1048_v29 = vld [vmem:[%s2217_s16 + $0x20] sm:$0xff] }
 0x583   : > { %1887 = vmatprep.subr.bf16.mxu0 %v1959_v0  ;;  %v1891_v43 = vpack.c.bf16 %v1049_v42, %v1048_v29 }
 0x586   : > { %1889 = vmatpush3.bf16.msra.mxu0 %v1888_v41 }
 0x587   : > { %1890 = vmatprep.subr.bf16.mxu0 %v1959_v0 }
 0x58a   : > { %1892 = vmatpush3.bf16.msra.mxu0 %v1891_v43 }
 0x58b   : > { %1893 = vmatprep.subr.bf16.mxu0 %v1959_v0 }
 0x58e   : > { %1895 = vmatpush3.bf16.msra.mxu0 %v1894_v57 }
 0x58f   : > { %1896 = vmatprep.subr.bf16.mxu0 %v1959_v0 }
 0x592   : > { %1898 = vmatpush3.bf16.msra.mxu0 %v1897_v60 }
 0x593   : > { %1899 = vmatprep.subr.bf16.mxu0 %v1959_v0 }
 0x596   : > { %1901 = vmatpush3.bf16.msra.mxu0 %v1900_v63 }
 0x597   : > { %1902 = vmatprep.subr.bf16.mxu0 %v1959_v0 }
 0x59a   : > { %1904 = vmatpush3.bf16.msra.mxu0 %v1903_v3 }
 0x59b   : > { %1905 = vmatprep.subr.bf16.mxu0 %v1959_v0 }
 0x59e   : > { %1907 = vmatpush3.bf16.msra.mxu0 %v1906_v6 }
 0x654   : > { %v946_v44 = vpop.f32.mrb[6].mxu0 }
 0x655   : > { %v951_v45 = vrot.slane %v946_v44, 2  ;;  %v952_v46 = vrot.slane %v946_v44, 3  ;;  %v1637_v47 = vpop.f32.mrb[7].mxu0 }
 0x657   : > { %v955_v48 = vadd.f32 %v951_v45, %v2101_v38  ;;  %v956_v49 = vadd.f32 %v952_v46, %v2099_v36 }
 0x659   : > { %1943 = vtanh.f32 %v955_v48 }
 0x65a   : > { %1945 = vtanh.f32 %v956_v49 }
 0x663   : > { %v1944_v50 = vpop.eup %1943 }
 0x664   : > { %v1946_v51 = vpop.eup %1945  ;;  %v961_v52 = vrot.slane %v1944_v50, 6 }
 0x665   : > { %v962_v53 = vrot.slane %v1946_v51, 5 }
 0x667   : > { %v963_v54 = vsel %vm454_vm2, %v962_v53, %v961_v52 }
 0x668   : > { %1671 = vmatmul.mubr.f32.vlgmr.msra.gmra.mrb[6].mxu1 %v963_v54 }
 0x73b   : > { %v1031_v7 = vpop.f32.mrb[6].mxu1 }
 0x73c   : > { %v1036_v8 = vrot.slane %v1031_v7, 1  ;;  %v1037_v9 = vrot.slane %v1031_v7, 2  ;;  %v1672_v11 = vpop.f32.mrb[7].mxu1 }
 0x73e   : > { %v1040_v12 = vadd.f32 %v1036_v8, %v2101_v38  ;;  %v1041_v14 = vadd.f32 %v1037_v9, %v2099_v36 }
 0x740   : > { %1947 = vtanh.f32 %v1040_v12 }
 0x741   : > { %1949 = vtanh.f32 %v1041_v14 }
 0x74a   : > { %v1948_v15 = vpop.eup %1947 }
 0x74b   : > { %v1950_v16 = vpop.eup %1949  ;;  %v1069_v18 = vrot.slane %v1948_v15, 7 }
 0x74c   : > { %v1070_v0 = vrot.slane %v1950_v16, 6 }
 0x74e   : > { %v1071_v19 = vsel %vm454_vm2, %v1070_v0, %v1069_v18 }
 0x74f   : > { %1706 = vmatmul.mubr.f32.vlgmr.msra.gmra.mrb[8].mxu0 %v1071_v19 }
 0x822   : > { %v1139_v36 = vpop.f32.mrb[8].mxu0 }
 0x823   : > { %v1140_v38 = vadd.f32 %v1268_v21, %v1139_v36  ;;  %v1707_v22 = vpop.f32.mrb[9].mxu0 }
 0x825   : > { %1143 = vst [vmem:[%s337_s25] sm:$0x3] %v1140_v38 }
 0x826 PF: > { %s16_s21 = sadd.s32 1, %s1957_s21  }
 0x827   : > { %p13_p4 = scmp.ge.s32.totalorder %s16_s21, 4  }
 0x829   :  { %15 = sbr.rel (!%p13_p4) target bundleno = 1 (0x1), region = 89 }

</bundles_post_ra>
